<compile_context>
chip_gen: v7x
topology: tpu7x:2x2x1
jax: 0.10.0
libtpu: 0.0.40
codegen_flags: <defaults>
</compile_context>

<pallas_src>
import jax
import jax.numpy as jnp
from jax import lax
from jax.experimental import pallas as pl
from jax.experimental.pallas import tpu as pltpu

VOCAB = 16            # len(token_to_ix)
EMBED = 32            # embedding_dim
HIDDEN = 32           # hidden_dim (bidirectional => HH = 16 per direction)
HH = HIDDEN // 2
TAGS = 8              # len(label_to_ix)
SEQ = 8               # sentence length
GATE_W = 2 * HH       # 32 lanes per fused (fwd|bwd) gate
TAGS_PAD = 128        # lane-dense output width (sliced back in the wrapper)


def bilstm_kernel(x2_ref, wx_ref, wh_ref, b_ref, h0_ref, c0_ref,
                  wout_ref, bout_ref, out_ref):
    T = x2_ref.shape[0]

    # Batched input projection for BOTH directions & all timesteps in one MXU op.
    #   x2 row t = [emb[t] | emb[T-1-t]]                      (2E,)
    #   wx       = block-diag(Wih_f, Wih_b), gate-major cols  (2E, 128)
    # -> xw row t = pre-activations [i_f i_b f_f f_b g_f g_b o_f o_b]
    xw = jnp.dot(x2_ref[...], wx_ref[...],
                 preferred_element_type=jnp.float32) + b_ref[...]

    wh = wh_ref[...]          # (2*HH, 128) block-diag recurrent weights
    h = h0_ref[...]           # (1, 2*HH) = [h_f | h_b]
    c = c0_ref[...]           # (1, 2*HH) = [c_f | c_b]

    hf_steps = []
    hb_steps = []
    # T is a compile-time constant (=8): full static unroll so the scheduler can
    # overlap MXU pushes, EUP sigmoid/tanh and VPU work across iterations.
    for t in range(T):
        gates = xw[t:t + 1, :] + jnp.dot(h, wh,
                                         preferred_element_type=jnp.float32)
        i = jax.nn.sigmoid(gates[:, 0 * GATE_W:1 * GATE_W])
        f = jax.nn.sigmoid(gates[:, 1 * GATE_W:2 * GATE_W])
        g = jnp.tanh(gates[:, 2 * GATE_W:3 * GATE_W])
        o = jax.nn.sigmoid(gates[:, 3 * GATE_W:4 * GATE_W])
        c = f * c + i * g
        h = o * jnp.tanh(c)
        hf_steps.append(h[:, :HH])      # forward hidden  -> output row t
        hb_steps.append(h[:, HH:])      # backward hidden -> output row T-1-t

    # Assemble (T, 2*HH) sequence from register-resident step outputs.
    hf_all = jnp.concatenate(hf_steps, axis=0)             # (T, HH)
    hb_all = jnp.concatenate(hb_steps[::-1], axis=0)       # (T, HH), output order
    lstm_out = jnp.concatenate([hf_all, hb_all], axis=1)   # (T, 2*HH)

    # hidden2tag: single lane-dense (padded to 128) matmul + unmasked store.
    out_ref[...] = jnp.dot(lstm_out, wout_ref[...],
                           preferred_element_type=jnp.float32) + bout_ref[...]


def _gate_block(w, g):
    # PyTorch packs gates row-wise as [i; f; g; o]; return transposed (in, HH).
    return w[g * HH:(g + 1) * HH, :].T


def _pack_fused_weights(params):
    """Build block-diagonal, gate-major fused weights for both directions."""
    zeros_xe = jnp.zeros((EMBED, HH), jnp.float32)
    zeros_hh = jnp.zeros((HH, HH), jnp.float32)
    wx_cols, wh_cols, b_cols = [], [], []
    for g in range(4):                              # gate order i, f, g, o
        # forward-direction columns for gate g
        wx_cols.append(jnp.concatenate(
            [_gate_block(params["w_ih_f"], g), zeros_xe], axis=0))
        wh_cols.append(jnp.concatenate(
            [_gate_block(params["w_hh_f"], g), zeros_hh], axis=0))
        b_cols.append(params["b_ih_f"][g * HH:(g + 1) * HH]
                      + params["b_hh_f"][g * HH:(g + 1) * HH])
        # backward-direction columns for gate g
        wx_cols.append(jnp.concatenate(
            [zeros_xe, _gate_block(params["w_ih_b"], g)], axis=0))
        wh_cols.append(jnp.concatenate(
            [zeros_hh, _gate_block(params["w_hh_b"], g)], axis=0))
        b_cols.append(params["b_ih_b"][g * HH:(g + 1) * HH]
                      + params["b_hh_b"][g * HH:(g + 1) * HH])
    w_x = jnp.concatenate(wx_cols, axis=1)          # (2*EMBED, 128) = (64, 128)
    w_h = jnp.concatenate(wh_cols, axis=1)          # (2*HH,    128) = (32, 128)
    b_all = jnp.concatenate(b_cols)[None, :]        # (1, 128)
    return w_x, w_h, b_all


def bilstm_forward(token_ids, params):
    # Glue: embedding lookup (nn.Embedding gather) stays in plain JAX.
    emb = params["embedding"][token_ids].astype(jnp.float32)     # (T, E)
    T = emb.shape[0]

    # Row t carries the inputs for BOTH directions at interleaved step t.
    x2 = jnp.concatenate([emb, emb[::-1]], axis=1)               # (T, 2E)

    w_x, w_h, b_all = _pack_fused_weights(params)

    # hidden2tag weights, zero-padded to a lane-dense output width.
    wout = jnp.zeros((2 * HH, TAGS_PAD), jnp.float32)
    wout = wout.at[:, :TAGS].set(params["w_out"].T.astype(jnp.float32))
    bout = jnp.zeros((1, TAGS_PAD), jnp.float32)
    bout = bout.at[:, :TAGS].set(params["b_out"].astype(jnp.float32))

    h0 = params["h0"].astype(jnp.float32).reshape(1, 2 * HH)     # [h0_f | h0_b]
    c0 = params["c0"].astype(jnp.float32).reshape(1, 2 * HH)

    vmem = pl.BlockSpec(memory_space=pltpu.MemorySpace.VMEM)
    out_pad = pl.pallas_call(
        bilstm_kernel,
        out_shape=jax.ShapeDtypeStruct((T, TAGS_PAD), jnp.float32),
        in_specs=[vmem] * 8,
        out_specs=vmem,
    )(x2, w_x, w_h, b_all, h0, c0, wout, bout)
    return out_pad[:, :TAGS]


def reference_forward(token_ids, params):
    """Pure-JAX reference matching torch nn.LSTM(bidirectional) + Linear."""
    emb = params["embedding"][token_ids].astype(jnp.float32)

    def run_dir(wih, whh, bih, bhh, h0, c0, xs):
        def step(carry, x_t):
            h, c = carry
            gates = x_t @ wih.T + bih + h @ whh.T + bhh
            i, f, g, o = jnp.split(gates, 4)
            i = jax.nn.sigmoid(i)
            f = jax.nn.sigmoid(f)
            g = jnp.tanh(g)
            o = jax.nn.sigmoid(o)
            c = f * c + i * g
            h = o * jnp.tanh(c)
            return (h, c), h
        _, hs = lax.scan(step, (h0, c0), xs)
        return hs

    h0 = params["h0"].reshape(2, HH)
    c0 = params["c0"].reshape(2, HH)
    hf = run_dir(params["w_ih_f"], params["w_hh_f"], params["b_ih_f"],
                 params["b_hh_f"], h0[0], c0[0], emb)
    hb = run_dir(params["w_ih_b"], params["w_hh_b"], params["b_ih_b"],
                 params["b_hh_b"], h0[1], c0[1], emb[::-1])[::-1]
    lstm_out = jnp.concatenate([hf, hb], axis=-1)
    return lstm_out @ params["w_out"].T + params["b_out"]


def init_params(key):
    ks = jax.random.split(key, 14)
    s_lstm = 1.0 / float(HH) ** 0.5
    s_lin = 1.0 / float(HIDDEN) ** 0.5

    def u(k, shape, s):
        return jax.random.uniform(k, shape, jnp.float32, -s, s)

    return {
        "embedding": jax.random.normal(ks[0], (VOCAB, EMBED), jnp.float32),
        # forward direction LSTM params (PyTorch shapes)
        "w_ih_f": u(ks[1], (4 * HH, EMBED), s_lstm),
        "w_hh_f": u(ks[2], (4 * HH, HH), s_lstm),
        "b_ih_f": u(ks[3], (4 * HH,), s_lstm),
        "b_hh_f": u(ks[4], (4 * HH,), s_lstm),
        # reverse direction LSTM params
        "w_ih_b": u(ks[5], (4 * HH, EMBED), s_lstm),
        "w_hh_b": u(ks[6], (4 * HH, HH), s_lstm),
        "b_ih_b": u(ks[7], (4 * HH,), s_lstm),
        "b_hh_b": u(ks[8], (4 * HH,), s_lstm),
        # hidden2tag Linear
        "w_out": u(ks[9], (TAGS, HIDDEN), s_lin),
        "b_out": u(ks[10], (TAGS,), s_lin),
        # init_hidden(): torch.randn(2, 1, H//2) — made deterministic here
        "h0": jax.random.normal(ks[11], (2, 1, HH), jnp.float32),
        "c0": jax.random.normal(ks[12], (2, 1, HH), jnp.float32),
    }


if __name__ == "__main__":
    key = jax.random.PRNGKey(0)
    k_params, k_sent = jax.random.split(key)
    params = init_params(k_params)
    # sentence: sequence of token ids (already "prepared")
    token_ids = jax.random.randint(k_sent, (SEQ,), 0, VOCAB)

    lstm_feats = bilstm_forward(token_ids, params)
    lstm_feats = jax.block_until_ready(lstm_feats)

    ref = reference_forward(token_ids, params)
    assert lstm_feats.shape == (SEQ, TAGS)
    assert jnp.allclose(lstm_feats, ref, rtol=1e-3, atol=1e-3), "mismatch vs reference"

    print("KERNEL_OK")
</pallas_src>

<mosaic_0001>
module attributes {stable_mosaic.version = 11 : i64} {
  func.func @bilstm_kernel(%arg0: memref<8x64xf32, #tpu.memory_space<vmem>>, %arg1: memref<64x128xf32, #tpu.memory_space<vmem>>, %arg2: memref<32x128xf32, #tpu.memory_space<vmem>>, %arg3: memref<1x128xf32, #tpu.memory_space<vmem>>, %arg4: memref<1x32xf32, #tpu.memory_space<vmem>>, %arg5: memref<1x32xf32, #tpu.memory_space<vmem>>, %arg6: memref<32x128xf32, #tpu.memory_space<vmem>>, %arg7: memref<1x128xf32, #tpu.memory_space<vmem>>, %arg8: memref<8x128xf32, #tpu.memory_space<vmem>>) attributes {dimension_semantics = [], scalar_prefetch = 0 : i64, scratch_operands = 0 : i64, tpu.core_type = #tpu.core_type<tc>} {
    %c0 = arith.constant 0 : index
    %c0_0 = arith.constant 0 : index
    %0 = vector.load %arg0[%c0, %c0_0] : memref<8x64xf32, #tpu.memory_space<vmem>>, vector<8x64xf32>
    %c0_1 = arith.constant 0 : index
    %c0_2 = arith.constant 0 : index
    %1 = vector.load %arg1[%c0_1, %c0_2] : memref<64x128xf32, #tpu.memory_space<vmem>>, vector<64x128xf32>
    %cst = arith.constant dense<0.000000e+00> : vector<8x128xf32>
    %2 = tpu.matmul %0, %1, %cst {dimension_numbers = #tpu.dot_dimension_numbers<[1], [0], [0], [1], [0, 0, 1, 1], [], []>} : vector<8x64xf32>, vector<64x128xf32>, vector<8x128xf32> -> vector<8x128xf32>
    %c0_3 = arith.constant 0 : index
    %c0_4 = arith.constant 0 : index
    %3 = vector.load %arg3[%c0_3, %c0_4] : memref<1x128xf32, #tpu.memory_space<vmem>>, vector<1x128xf32>
    %4 = vector.broadcast %3 : vector<1x128xf32> to vector<8x128xf32>
    %5 = arith.addf %2, %4 : vector<8x128xf32>
    %c0_5 = arith.constant 0 : index
    %c0_6 = arith.constant 0 : index
    %6 = vector.load %arg2[%c0_5, %c0_6] : memref<32x128xf32, #tpu.memory_space<vmem>>, vector<32x128xf32>
    %c0_7 = arith.constant 0 : index
    %c0_8 = arith.constant 0 : index
    %7 = vector.load %arg4[%c0_7, %c0_8] : memref<1x32xf32, #tpu.memory_space<vmem>>, vector<1x32xf32>
    %c0_9 = arith.constant 0 : index
    %c0_10 = arith.constant 0 : index
    %8 = vector.load %arg5[%c0_9, %c0_10] : memref<1x32xf32, #tpu.memory_space<vmem>>, vector<1x32xf32>
    %9 = vector.extract_strided_slice %5 {offsets = [0, 0], sizes = [1, 128], strides = [1, 1]} : vector<8x128xf32> to vector<1x128xf32>
    %cst_11 = arith.constant dense<0.000000e+00> : vector<1x128xf32>
    %10 = tpu.matmul %7, %6, %cst_11 {dimension_numbers = #tpu.dot_dimension_numbers<[1], [0], [0], [1], [0, 0, 1, 1], [], []>} : vector<1x32xf32>, vector<32x128xf32>, vector<1x128xf32> -> vector<1x128xf32>
    %11 = arith.addf %9, %10 : vector<1x128xf32>
    %12 = vector.extract_strided_slice %11 {offsets = [0, 0], sizes = [1, 32], strides = [1, 1]} : vector<1x128xf32> to vector<1x32xf32>
    %13 = arith.negf %12 : vector<1x32xf32>
    %14 = math.exp %13 : vector<1x32xf32>
    %cst_12 = arith.constant 1.000000e+00 : f32
    %15 = vector.broadcast %cst_12 : f32 to vector<1x32xf32>
    %16 = arith.addf %15, %14 : vector<1x32xf32>
    %17 = arith.divf %15, %16 : vector<1x32xf32>
    %18 = vector.extract_strided_slice %11 {offsets = [0, 32], sizes = [1, 32], strides = [1, 1]} : vector<1x128xf32> to vector<1x32xf32>
    %19 = arith.negf %18 : vector<1x32xf32>
    %20 = math.exp %19 : vector<1x32xf32>
    %cst_13 = arith.constant 1.000000e+00 : f32
    %21 = vector.broadcast %cst_13 : f32 to vector<1x32xf32>
    %22 = arith.addf %21, %20 : vector<1x32xf32>
    %23 = arith.divf %21, %22 : vector<1x32xf32>
    %24 = vector.extract_strided_slice %11 {offsets = [0, 64], sizes = [1, 32], strides = [1, 1]} : vector<1x128xf32> to vector<1x32xf32>
    %25 = math.tanh %24 : vector<1x32xf32>
    %26 = vector.extract_strided_slice %11 {offsets = [0, 96], sizes = [1, 32], strides = [1, 1]} : vector<1x128xf32> to vector<1x32xf32>
    %27 = arith.negf %26 : vector<1x32xf32>
    %28 = math.exp %27 : vector<1x32xf32>
    %cst_14 = arith.constant 1.000000e+00 : f32
    %29 = vector.broadcast %cst_14 : f32 to vector<1x32xf32>
    %30 = arith.addf %29, %28 : vector<1x32xf32>
    %31 = arith.divf %29, %30 : vector<1x32xf32>
    %32 = arith.mulf %23, %8 : vector<1x32xf32>
    %33 = arith.mulf %17, %25 : vector<1x32xf32>
    %34 = arith.addf %32, %33 : vector<1x32xf32>
    %35 = math.tanh %34 : vector<1x32xf32>
    %36 = arith.mulf %31, %35 : vector<1x32xf32>
    %37 = vector.extract_strided_slice %36 {offsets = [0, 0], sizes = [1, 16], strides = [1, 1]} : vector<1x32xf32> to vector<1x16xf32>
    %38 = vector.extract_strided_slice %36 {offsets = [0, 16], sizes = [1, 16], strides = [1, 1]} : vector<1x32xf32> to vector<1x16xf32>
    %39 = vector.extract_strided_slice %5 {offsets = [1, 0], sizes = [1, 128], strides = [1, 1]} : vector<8x128xf32> to vector<1x128xf32>
    %cst_15 = arith.constant dense<0.000000e+00> : vector<1x128xf32>
    %40 = tpu.matmul %36, %6, %cst_15 {dimension_numbers = #tpu.dot_dimension_numbers<[1], [0], [0], [1], [0, 0, 1, 1], [], []>} : vector<1x32xf32>, vector<32x128xf32>, vector<1x128xf32> -> vector<1x128xf32>
    %41 = arith.addf %39, %40 : vector<1x128xf32>
    %42 = vector.extract_strided_slice %41 {offsets = [0, 0], sizes = [1, 32], strides = [1, 1]} : vector<1x128xf32> to vector<1x32xf32>
    %43 = arith.negf %42 : vector<1x32xf32>
    %44 = math.exp %43 : vector<1x32xf32>
    %cst_16 = arith.constant 1.000000e+00 : f32
    %45 = vector.broadcast %cst_16 : f32 to vector<1x32xf32>
    %46 = arith.addf %45, %44 : vector<1x32xf32>
    %47 = arith.divf %45, %46 : vector<1x32xf32>
    %48 = vector.extract_strided_slice %41 {offsets = [0, 32], sizes = [1, 32], strides = [1, 1]} : vector<1x128xf32> to vector<1x32xf32>
    %49 = arith.negf %48 : vector<1x32xf32>
    %50 = math.exp %49 : vector<1x32xf32>
    %cst_17 = arith.constant 1.000000e+00 : f32
    %51 = vector.broadcast %cst_17 : f32 to vector<1x32xf32>
    %52 = arith.addf %51, %50 : vector<1x32xf32>
    %53 = arith.divf %51, %52 : vector<1x32xf32>
    %54 = vector.extract_strided_slice %41 {offsets = [0, 64], sizes = [1, 32], strides = [1, 1]} : vector<1x128xf32> to vector<1x32xf32>
    %55 = math.tanh %54 : vector<1x32xf32>
    %56 = vector.extract_strided_slice %41 {offsets = [0, 96], sizes = [1, 32], strides = [1, 1]} : vector<1x128xf32> to vector<1x32xf32>
    %57 = arith.negf %56 : vector<1x32xf32>
    %58 = math.exp %57 : vector<1x32xf32>
    %cst_18 = arith.constant 1.000000e+00 : f32
    %59 = vector.broadcast %cst_18 : f32 to vector<1x32xf32>
    %60 = arith.addf %59, %58 : vector<1x32xf32>
    %61 = arith.divf %59, %60 : vector<1x32xf32>
    %62 = arith.mulf %53, %34 : vector<1x32xf32>
    %63 = arith.mulf %47, %55 : vector<1x32xf32>
    %64 = arith.addf %62, %63 : vector<1x32xf32>
    %65 = math.tanh %64 : vector<1x32xf32>
    %66 = arith.mulf %61, %65 : vector<1x32xf32>
    %67 = vector.extract_strided_slice %66 {offsets = [0, 0], sizes = [1, 16], strides = [1, 1]} : vector<1x32xf32> to vector<1x16xf32>
    %68 = vector.extract_strided_slice %66 {offsets = [0, 16], sizes = [1, 16], strides = [1, 1]} : vector<1x32xf32> to vector<1x16xf32>
    %69 = vector.extract_strided_slice %5 {offsets = [2, 0], sizes = [1, 128], strides = [1, 1]} : vector<8x128xf32> to vector<1x128xf32>
    %cst_19 = arith.constant dense<0.000000e+00> : vector<1x128xf32>
    %70 = tpu.matmul %66, %6, %cst_19 {dimension_numbers = #tpu.dot_dimension_numbers<[1], [0], [0], [1], [0, 0, 1, 1], [], []>} : vector<1x32xf32>, vector<32x128xf32>, vector<1x128xf32> -> vector<1x128xf32>
    %71 = arith.addf %69, %70 : vector<1x128xf32>
    %72 = vector.extract_strided_slice %71 {offsets = [0, 0], sizes = [1, 32], strides = [1, 1]} : vector<1x128xf32> to vector<1x32xf32>
    %73 = arith.negf %72 : vector<1x32xf32>
    %74 = math.exp %73 : vector<1x32xf32>
    %cst_20 = arith.constant 1.000000e+00 : f32
    %75 = vector.broadcast %cst_20 : f32 to vector<1x32xf32>
    %76 = arith.addf %75, %74 : vector<1x32xf32>
    %77 = arith.divf %75, %76 : vector<1x32xf32>
    %78 = vector.extract_strided_slice %71 {offsets = [0, 32], sizes = [1, 32], strides = [1, 1]} : vector<1x128xf32> to vector<1x32xf32>
    %79 = arith.negf %78 : vector<1x32xf32>
    %80 = math.exp %79 : vector<1x32xf32>
    %cst_21 = arith.constant 1.000000e+00 : f32
    %81 = vector.broadcast %cst_21 : f32 to vector<1x32xf32>
    %82 = arith.addf %81, %80 : vector<1x32xf32>
    %83 = arith.divf %81, %82 : vector<1x32xf32>
    %84 = vector.extract_strided_slice %71 {offsets = [0, 64], sizes = [1, 32], strides = [1, 1]} : vector<1x128xf32> to vector<1x32xf32>
    %85 = math.tanh %84 : vector<1x32xf32>
    %86 = vector.extract_strided_slice %71 {offsets = [0, 96], sizes = [1, 32], strides = [1, 1]} : vector<1x128xf32> to vector<1x32xf32>
    %87 = arith.negf %86 : vector<1x32xf32>
    %88 = math.exp %87 : vector<1x32xf32>
    %cst_22 = arith.constant 1.000000e+00 : f32
    %89 = vector.broadcast %cst_22 : f32 to vector<1x32xf32>
    %90 = arith.addf %89, %88 : vector<1x32xf32>
    %91 = arith.divf %89, %90 : vector<1x32xf32>
    %92 = arith.mulf %83, %64 : vector<1x32xf32>
    %93 = arith.mulf %77, %85 : vector<1x32xf32>
    %94 = arith.addf %92, %93 : vector<1x32xf32>
    %95 = math.tanh %94 : vector<1x32xf32>
    %96 = arith.mulf %91, %95 : vector<1x32xf32>
    %97 = vector.extract_strided_slice %96 {offsets = [0, 0], sizes = [1, 16], strides = [1, 1]} : vector<1x32xf32> to vector<1x16xf32>
    %98 = vector.extract_strided_slice %96 {offsets = [0, 16], sizes = [1, 16], strides = [1, 1]} : vector<1x32xf32> to vector<1x16xf32>
    %99 = vector.extract_strided_slice %5 {offsets = [3, 0], sizes = [1, 128], strides = [1, 1]} : vector<8x128xf32> to vector<1x128xf32>
    %cst_23 = arith.constant dense<0.000000e+00> : vector<1x128xf32>
    %100 = tpu.matmul %96, %6, %cst_23 {dimension_numbers = #tpu.dot_dimension_numbers<[1], [0], [0], [1], [0, 0, 1, 1], [], []>} : vector<1x32xf32>, vector<32x128xf32>, vector<1x128xf32> -> vector<1x128xf32>
    %101 = arith.addf %99, %100 : vector<1x128xf32>
    %102 = vector.extract_strided_slice %101 {offsets = [0, 0], sizes = [1, 32], strides = [1, 1]} : vector<1x128xf32> to vector<1x32xf32>
    %103 = arith.negf %102 : vector<1x32xf32>
    %104 = math.exp %103 : vector<1x32xf32>
    %cst_24 = arith.constant 1.000000e+00 : f32
    %105 = vector.broadcast %cst_24 : f32 to vector<1x32xf32>
    %106 = arith.addf %105, %104 : vector<1x32xf32>
    %107 = arith.divf %105, %106 : vector<1x32xf32>
    %108 = vector.extract_strided_slice %101 {offsets = [0, 32], sizes = [1, 32], strides = [1, 1]} : vector<1x128xf32> to vector<1x32xf32>
    %109 = arith.negf %108 : vector<1x32xf32>
    %110 = math.exp %109 : vector<1x32xf32>
    %cst_25 = arith.constant 1.000000e+00 : f32
    %111 = vector.broadcast %cst_25 : f32 to vector<1x32xf32>
    %112 = arith.addf %111, %110 : vector<1x32xf32>
    %113 = arith.divf %111, %112 : vector<1x32xf32>
    %114 = vector.extract_strided_slice %101 {offsets = [0, 64], sizes = [1, 32], strides = [1, 1]} : vector<1x128xf32> to vector<1x32xf32>
    %115 = math.tanh %114 : vector<1x32xf32>
    %116 = vector.extract_strided_slice %101 {offsets = [0, 96], sizes = [1, 32], strides = [1, 1]} : vector<1x128xf32> to vector<1x32xf32>
    %117 = arith.negf %116 : vector<1x32xf32>
    %118 = math.exp %117 : vector<1x32xf32>
    %cst_26 = arith.constant 1.000000e+00 : f32
    %119 = vector.broadcast %cst_26 : f32 to vector<1x32xf32>
    %120 = arith.addf %119, %118 : vector<1x32xf32>
    %121 = arith.divf %119, %120 : vector<1x32xf32>
    %122 = arith.mulf %113, %94 : vector<1x32xf32>
    %123 = arith.mulf %107, %115 : vector<1x32xf32>
    %124 = arith.addf %122, %123 : vector<1x32xf32>
    %125 = math.tanh %124 : vector<1x32xf32>
    %126 = arith.mulf %121, %125 : vector<1x32xf32>
    %127 = vector.extract_strided_slice %126 {offsets = [0, 0], sizes = [1, 16], strides = [1, 1]} : vector<1x32xf32> to vector<1x16xf32>
    %128 = vector.extract_strided_slice %126 {offsets = [0, 16], sizes = [1, 16], strides = [1, 1]} : vector<1x32xf32> to vector<1x16xf32>
    %129 = vector.extract_strided_slice %5 {offsets = [4, 0], sizes = [1, 128], strides = [1, 1]} : vector<8x128xf32> to vector<1x128xf32>
    %cst_27 = arith.constant dense<0.000000e+00> : vector<1x128xf32>
    %130 = tpu.matmul %126, %6, %cst_27 {dimension_numbers = #tpu.dot_dimension_numbers<[1], [0], [0], [1], [0, 0, 1, 1], [], []>} : vector<1x32xf32>, vector<32x128xf32>, vector<1x128xf32> -> vector<1x128xf32>
    %131 = arith.addf %129, %130 : vector<1x128xf32>
    %132 = vector.extract_strided_slice %131 {offsets = [0, 0], sizes = [1, 32], strides = [1, 1]} : vector<1x128xf32> to vector<1x32xf32>
    %133 = arith.negf %132 : vector<1x32xf32>
    %134 = math.exp %133 : vector<1x32xf32>
    %cst_28 = arith.constant 1.000000e+00 : f32
    %135 = vector.broadcast %cst_28 : f32 to vector<1x32xf32>
    %136 = arith.addf %135, %134 : vector<1x32xf32>
    %137 = arith.divf %135, %136 : vector<1x32xf32>
    %138 = vector.extract_strided_slice %131 {offsets = [0, 32], sizes = [1, 32], strides = [1, 1]} : vector<1x128xf32> to vector<1x32xf32>
    %139 = arith.negf %138 : vector<1x32xf32>
    %140 = math.exp %139 : vector<1x32xf32>
    %cst_29 = arith.constant 1.000000e+00 : f32
    %141 = vector.broadcast %cst_29 : f32 to vector<1x32xf32>
    %142 = arith.addf %141, %140 : vector<1x32xf32>
    %143 = arith.divf %141, %142 : vector<1x32xf32>
    %144 = vector.extract_strided_slice %131 {offsets = [0, 64], sizes = [1, 32], strides = [1, 1]} : vector<1x128xf32> to vector<1x32xf32>
    %145 = math.tanh %144 : vector<1x32xf32>
    %146 = vector.extract_strided_slice %131 {offsets = [0, 96], sizes = [1, 32], strides = [1, 1]} : vector<1x128xf32> to vector<1x32xf32>
    %147 = arith.negf %146 : vector<1x32xf32>
    %148 = math.exp %147 : vector<1x32xf32>
    %cst_30 = arith.constant 1.000000e+00 : f32
    %149 = vector.broadcast %cst_30 : f32 to vector<1x32xf32>
    %150 = arith.addf %149, %148 : vector<1x32xf32>
    %151 = arith.divf %149, %150 : vector<1x32xf32>
    %152 = arith.mulf %143, %124 : vector<1x32xf32>
    %153 = arith.mulf %137, %145 : vector<1x32xf32>
    %154 = arith.addf %152, %153 : vector<1x32xf32>
    %155 = math.tanh %154 : vector<1x32xf32>
    %156 = arith.mulf %151, %155 : vector<1x32xf32>
    %157 = vector.extract_strided_slice %156 {offsets = [0, 0], sizes = [1, 16], strides = [1, 1]} : vector<1x32xf32> to vector<1x16xf32>
    %158 = vector.extract_strided_slice %156 {offsets = [0, 16], sizes = [1, 16], strides = [1, 1]} : vector<1x32xf32> to vector<1x16xf32>
    %159 = vector.extract_strided_slice %5 {offsets = [5, 0], sizes = [1, 128], strides = [1, 1]} : vector<8x128xf32> to vector<1x128xf32>
    %cst_31 = arith.constant dense<0.000000e+00> : vector<1x128xf32>
    %160 = tpu.matmul %156, %6, %cst_31 {dimension_numbers = #tpu.dot_dimension_numbers<[1], [0], [0], [1], [0, 0, 1, 1], [], []>} : vector<1x32xf32>, vector<32x128xf32>, vector<1x128xf32> -> vector<1x128xf32>
    %161 = arith.addf %159, %160 : vector<1x128xf32>
    %162 = vector.extract_strided_slice %161 {offsets = [0, 0], sizes = [1, 32], strides = [1, 1]} : vector<1x128xf32> to vector<1x32xf32>
    %163 = arith.negf %162 : vector<1x32xf32>
    %164 = math.exp %163 : vector<1x32xf32>
    %cst_32 = arith.constant 1.000000e+00 : f32
    %165 = vector.broadcast %cst_32 : f32 to vector<1x32xf32>
    %166 = arith.addf %165, %164 : vector<1x32xf32>
    %167 = arith.divf %165, %166 : vector<1x32xf32>
    %168 = vector.extract_strided_slice %161 {offsets = [0, 32], sizes = [1, 32], strides = [1, 1]} : vector<1x128xf32> to vector<1x32xf32>
    %169 = arith.negf %168 : vector<1x32xf32>
    %170 = math.exp %169 : vector<1x32xf32>
    %cst_33 = arith.constant 1.000000e+00 : f32
    %171 = vector.broadcast %cst_33 : f32 to vector<1x32xf32>
    %172 = arith.addf %171, %170 : vector<1x32xf32>
    %173 = arith.divf %171, %172 : vector<1x32xf32>
    %174 = vector.extract_strided_slice %161 {offsets = [0, 64], sizes = [1, 32], strides = [1, 1]} : vector<1x128xf32> to vector<1x32xf32>
    %175 = math.tanh %174 : vector<1x32xf32>
    %176 = vector.extract_strided_slice %161 {offsets = [0, 96], sizes = [1, 32], strides = [1, 1]} : vector<1x128xf32> to vector<1x32xf32>
    %177 = arith.negf %176 : vector<1x32xf32>
    %178 = math.exp %177 : vector<1x32xf32>
    %cst_34 = arith.constant 1.000000e+00 : f32
    %179 = vector.broadcast %cst_34 : f32 to vector<1x32xf32>
    %180 = arith.addf %179, %178 : vector<1x32xf32>
    %181 = arith.divf %179, %180 : vector<1x32xf32>
    %182 = arith.mulf %173, %154 : vector<1x32xf32>
    %183 = arith.mulf %167, %175 : vector<1x32xf32>
    %184 = arith.addf %182, %183 : vector<1x32xf32>
    %185 = math.tanh %184 : vector<1x32xf32>
    %186 = arith.mulf %181, %185 : vector<1x32xf32>
    %187 = vector.extract_strided_slice %186 {offsets = [0, 0], sizes = [1, 16], strides = [1, 1]} : vector<1x32xf32> to vector<1x16xf32>
    %188 = vector.extract_strided_slice %186 {offsets = [0, 16], sizes = [1, 16], strides = [1, 1]} : vector<1x32xf32> to vector<1x16xf32>
    %189 = vector.extract_strided_slice %5 {offsets = [6, 0], sizes = [1, 128], strides = [1, 1]} : vector<8x128xf32> to vector<1x128xf32>
    %cst_35 = arith.constant dense<0.000000e+00> : vector<1x128xf32>
    %190 = tpu.matmul %186, %6, %cst_35 {dimension_numbers = #tpu.dot_dimension_numbers<[1], [0], [0], [1], [0, 0, 1, 1], [], []>} : vector<1x32xf32>, vector<32x128xf32>, vector<1x128xf32> -> vector<1x128xf32>
    %191 = arith.addf %189, %190 : vector<1x128xf32>
    %192 = vector.extract_strided_slice %191 {offsets = [0, 0], sizes = [1, 32], strides = [1, 1]} : vector<1x128xf32> to vector<1x32xf32>
    %193 = arith.negf %192 : vector<1x32xf32>
    %194 = math.exp %193 : vector<1x32xf32>
    %cst_36 = arith.constant 1.000000e+00 : f32
    %195 = vector.broadcast %cst_36 : f32 to vector<1x32xf32>
    %196 = arith.addf %195, %194 : vector<1x32xf32>
    %197 = arith.divf %195, %196 : vector<1x32xf32>
    %198 = vector.extract_strided_slice %191 {offsets = [0, 32], sizes = [1, 32], strides = [1, 1]} : vector<1x128xf32> to vector<1x32xf32>
    %199 = arith.negf %198 : vector<1x32xf32>
    %200 = math.exp %199 : vector<1x32xf32>
    %cst_37 = arith.constant 1.000000e+00 : f32
    %201 = vector.broadcast %cst_37 : f32 to vector<1x32xf32>
    %202 = arith.addf %201, %200 : vector<1x32xf32>
    %203 = arith.divf %201, %202 : vector<1x32xf32>
    %204 = vector.extract_strided_slice %191 {offsets = [0, 64], sizes = [1, 32], strides = [1, 1]} : vector<1x128xf32> to vector<1x32xf32>
    %205 = math.tanh %204 : vector<1x32xf32>
    %206 = vector.extract_strided_slice %191 {offsets = [0, 96], sizes = [1, 32], strides = [1, 1]} : vector<1x128xf32> to vector<1x32xf32>
    %207 = arith.negf %206 : vector<1x32xf32>
    %208 = math.exp %207 : vector<1x32xf32>
    %cst_38 = arith.constant 1.000000e+00 : f32
    %209 = vector.broadcast %cst_38 : f32 to vector<1x32xf32>
    %210 = arith.addf %209, %208 : vector<1x32xf32>
    %211 = arith.divf %209, %210 : vector<1x32xf32>
    %212 = arith.mulf %203, %184 : vector<1x32xf32>
    %213 = arith.mulf %197, %205 : vector<1x32xf32>
    %214 = arith.addf %212, %213 : vector<1x32xf32>
    %215 = math.tanh %214 : vector<1x32xf32>
    %216 = arith.mulf %211, %215 : vector<1x32xf32>
    %217 = vector.extract_strided_slice %216 {offsets = [0, 0], sizes = [1, 16], strides = [1, 1]} : vector<1x32xf32> to vector<1x16xf32>
    %218 = vector.extract_strided_slice %216 {offsets = [0, 16], sizes = [1, 16], strides = [1, 1]} : vector<1x32xf32> to vector<1x16xf32>
    %219 = vector.extract_strided_slice %5 {offsets = [7, 0], sizes = [1, 128], strides = [1, 1]} : vector<8x128xf32> to vector<1x128xf32>
    %cst_39 = arith.constant dense<0.000000e+00> : vector<1x128xf32>
    %220 = tpu.matmul %216, %6, %cst_39 {dimension_numbers = #tpu.dot_dimension_numbers<[1], [0], [0], [1], [0, 0, 1, 1], [], []>} : vector<1x32xf32>, vector<32x128xf32>, vector<1x128xf32> -> vector<1x128xf32>
    %221 = arith.addf %219, %220 : vector<1x128xf32>
    %222 = vector.extract_strided_slice %221 {offsets = [0, 0], sizes = [1, 32], strides = [1, 1]} : vector<1x128xf32> to vector<1x32xf32>
    %223 = arith.negf %222 : vector<1x32xf32>
    %224 = math.exp %223 : vector<1x32xf32>
    %cst_40 = arith.constant 1.000000e+00 : f32
    %225 = vector.broadcast %cst_40 : f32 to vector<1x32xf32>
    %226 = arith.addf %225, %224 : vector<1x32xf32>
    %227 = arith.divf %225, %226 : vector<1x32xf32>
    %228 = vector.extract_strided_slice %221 {offsets = [0, 32], sizes = [1, 32], strides = [1, 1]} : vector<1x128xf32> to vector<1x32xf32>
    %229 = arith.negf %228 : vector<1x32xf32>
    %230 = math.exp %229 : vector<1x32xf32>
    %cst_41 = arith.constant 1.000000e+00 : f32
    %231 = vector.broadcast %cst_41 : f32 to vector<1x32xf32>
    %232 = arith.addf %231, %230 : vector<1x32xf32>
    %233 = arith.divf %231, %232 : vector<1x32xf32>
    %234 = vector.extract_strided_slice %221 {offsets = [0, 64], sizes = [1, 32], strides = [1, 1]} : vector<1x128xf32> to vector<1x32xf32>
    %235 = math.tanh %234 : vector<1x32xf32>
    %236 = vector.extract_strided_slice %221 {offsets = [0, 96], sizes = [1, 32], strides = [1, 1]} : vector<1x128xf32> to vector<1x32xf32>
    %237 = arith.negf %236 : vector<1x32xf32>
    %238 = math.exp %237 : vector<1x32xf32>
    %cst_42 = arith.constant 1.000000e+00 : f32
    %239 = vector.broadcast %cst_42 : f32 to vector<1x32xf32>
    %240 = arith.addf %239, %238 : vector<1x32xf32>
    %241 = arith.divf %239, %240 : vector<1x32xf32>
    %242 = arith.mulf %233, %214 : vector<1x32xf32>
    %243 = arith.mulf %227, %235 : vector<1x32xf32>
    %244 = arith.addf %242, %243 : vector<1x32xf32>
    %245 = math.tanh %244 : vector<1x32xf32>
    %246 = arith.mulf %241, %245 : vector<1x32xf32>
    %247 = vector.extract_strided_slice %246 {offsets = [0, 0], sizes = [1, 16], strides = [1, 1]} : vector<1x32xf32> to vector<1x16xf32>
    %248 = vector.extract_strided_slice %246 {offsets = [0, 16], sizes = [1, 16], strides = [1, 1]} : vector<1x32xf32> to vector<1x16xf32>
    %249 = tpu.concatenate %37, %67, %97, %127, %157, %187, %217, %247 in 0 : vector<1x16xf32>, vector<1x16xf32>, vector<1x16xf32>, vector<1x16xf32>, vector<1x16xf32>, vector<1x16xf32>, vector<1x16xf32>, vector<1x16xf32> -> vector<8x16xf32>
    %250 = tpu.concatenate %248, %218, %188, %158, %128, %98, %68, %38 in 0 : vector<1x16xf32>, vector<1x16xf32>, vector<1x16xf32>, vector<1x16xf32>, vector<1x16xf32>, vector<1x16xf32>, vector<1x16xf32>, vector<1x16xf32> -> vector<8x16xf32>
    %251 = tpu.concatenate %249, %250 in 1 : vector<8x16xf32>, vector<8x16xf32> -> vector<8x32xf32>
    %c0_43 = arith.constant 0 : index
    %c0_44 = arith.constant 0 : index
    %252 = vector.load %arg6[%c0_43, %c0_44] : memref<32x128xf32, #tpu.memory_space<vmem>>, vector<32x128xf32>
    %cst_45 = arith.constant dense<0.000000e+00> : vector<8x128xf32>
    %253 = tpu.matmul %251, %252, %cst_45 {dimension_numbers = #tpu.dot_dimension_numbers<[1], [0], [0], [1], [0, 0, 1, 1], [], []>} : vector<8x32xf32>, vector<32x128xf32>, vector<8x128xf32> -> vector<8x128xf32>
    %c0_46 = arith.constant 0 : index
    %c0_47 = arith.constant 0 : index
    %254 = vector.load %arg7[%c0_46, %c0_47] : memref<1x128xf32, #tpu.memory_space<vmem>>, vector<1x128xf32>
    %255 = vector.broadcast %254 : vector<1x128xf32> to vector<8x128xf32>
    %256 = arith.addf %253, %255 : vector<8x128xf32>
    %c0_48 = arith.constant 0 : index
    %c0_49 = arith.constant 0 : index
    %257 = vector.load %arg8[%c0_48, %c0_49] : memref<8x128xf32, #tpu.memory_space<vmem>>, vector<8x128xf32>
    tpu.vector_store %arg8[%c0_48, %c0_49], %256 {strides = array<i32>} : memref<8x128xf32, #tpu.memory_space<vmem>>, vector<8x128xf32>,
    return
  }
}

</mosaic_0001>

<bundles_post_ra>
// kernel: tpu_custom_call.1
= control target key start
LH: loop header
LB: loop body
LE: loop exit
PB: predicated region body
PF: predicated region fallthrough
CT: control target
= control target key end

     0   :  { %13 = vsyncpa [#allocation3], 0  ;;  %s1934_s0 = inlined_call_operand.hbm [shape: f32[8,64], index: 0, kind: input, shape index: {}]   ;;  %s1935_s1 = inlined_call_operand.hbm [shape: f32[64,128], index: 1, kind: input, shape index: {}]   ;;  %s1936_s2 = inlined_call_operand.hbm [shape: f32[32,128], index: 2, kind: input, shape index: {}]   ;;  %s1937_s3 = inlined_call_operand.vmem [shape: f32[1,128], index: 3, kind: input, shape index: {}]   ;;  %s1938_s4 = inlined_call_operand.vmem [shape: f32[1,32], index: 4, kind: input, shape index: {}]   ;;  %s1939_s5 = inlined_call_operand.vmem [shape: f32[1,32], index: 5, kind: input, shape index: {}]   ;;  %s1940_s6 = inlined_call_operand.hbm [shape: f32[32,128], index: 6, kind: input, shape index: {}]   ;;  %s1941_s7 = inlined_call_operand.vmem [shape: f32[1,128], index: 7, kind: input, shape index: {}]   ;;  %s1942_s8 = inlined_call_operand.hbm [shape: f32[8,128], index: 8, kind: output, shape index: {}]  }
   0x1   :  { %14 = vsyncpa [#allocation6], 0 }
   0x2   :  { %15 = vsyncpa [#allocation9], 0 }
   0x3   :  { %16 = vsyncpa [#allocation4], 0  ;;  %s1637_s27 = smov [#allocation5]   ;;  %s1519_s9 = scalar_lea.hbm %s1935_s1, 1024 }
   0x4   :  { %s32_s28 = sshll.u32 %s1637_s27, 4  ;;  %p1520_p0 = scmp.ne.s32.totalorder %s1935_s1, %s1519_s9  ;;  %s33_s28 = int_to_ptr.vmem [resolvable:$true] %s32_s28 }
   0x5   :  { %p1523_p1 = scmp.lt.u32.totalorder %s1519_s9, %s1935_s1 }
   0x7   :  { %p1525_p2 = pnand %p1523_p1, %p1520_p0 }
   0x9   :  { %1528 = shalt.err (!%p1525_p2)
}
   0xa   :  { %s1529_s14 = scalar_lea.vmem %s33_s28, 1024  ;;  %p1534_p4 = scmp.lt.s32.totalorder %s33_s28, %s33_s28 }
   0xb   :  { %p1530_p3 = scmp.ne.s32.totalorder %s33_s28, %s1529_s14  ;;  %p1535_p5 = scmp.lt.s32.totalorder %s1529_s14, %s1529_s14 }
   0xd   :  { %p1536_p6 = por %p1535_p5, %p1534_p4 }
   0xf   :  { %p1537_p7 = pnand %p1536_p6, %p1530_p3 }
  0x11   :  { %1540 = shalt.err (!%p1537_p7)
}
  0x12   :  { %s1638_s15 = smov 128   ;;  %s1639_s16 = smov 8  }
  0x13   :  { %38 = dma.hbm_to_vmem [thread:$0]  %s1935_s1, 1024, %s33_s28, [#allocation6], %s1638_s15, %s1638_s15, %s1639_s16  }
  0x14   :  { %s1640_s19 = smov [#allocation2]   ;;  %s1641_s21 = smov [#allocation7]  }
  0x15   :  { %s23_s20 = sshll.u32 %s1640_s19, 4  ;;  %s44_s22 = sshll.u32 %s1641_s21, 4  ;;  %s24_s20 = int_to_ptr.vmem [resolvable:$true] %s23_s20  ;;  %s45_s22 = int_to_ptr.vmem [resolvable:$true] %s44_s22 }
  0x16   :  { %s1541_s25 = scalar_lea.hbm %s1934_s0, 128 }
  0x17   :  { %p1542_p8 = scmp.ne.s32.totalorder %s1934_s0, %s1541_s25  ;;  %p1545_p9 = scmp.lt.u32.totalorder %s1541_s25, %s1934_s0 }
  0x19   :  { %p1547_p10 = pnand %p1545_p9, %p1542_p8 }
  0x1b   :  { %1550 = shalt.err (!%p1547_p10)
}
  0x1c   :  { %s1551_s1 = scalar_lea.vmem %s24_s20, 128  ;;  %p1556_p12 = scmp.lt.s32.totalorder %s24_s20, %s24_s20 }
  0x1d   :  { %p1552_p11 = scmp.ne.s32.totalorder %s24_s20, %s1551_s1  ;;  %p1557_p13 = scmp.lt.s32.totalorder %s1551_s1, %s1551_s1 }
  0x1f   :  { %p1558_p0 = por %p1557_p13, %p1556_p12 }
  0x21   :  { %p1559_p1 = pnand %p1558_p0, %p1552_p11 }
  0x23   :  { %1562 = shalt.err (!%p1559_p1)
}
  0x24   :  { %26 = dma.hbm_to_vmem [thread:$0]  %s1934_s0, 128, %s24_s20, [#allocation3]  }
  0x25   :  { %s1563_s12 = scalar_lea.hbm %s1936_s2, 512 }
  0x26   :  { %p1564_p2 = scmp.ne.s32.totalorder %s1936_s2, %s1563_s12  ;;  %p1567_p3 = scmp.lt.u32.totalorder %s1563_s12, %s1936_s2 }
  0x28   :  { %p1569_p4 = pnand %p1567_p3, %p1564_p2 }
  0x2a   :  { %1572 = shalt.err (!%p1569_p4)
}
  0x2b   :  { %s1573_s19 = scalar_lea.vmem %s45_s22, 512  ;;  %p1578_p6 = scmp.lt.s32.totalorder %s45_s22, %s45_s22 }
  0x2c   :  { %p1574_p5 = scmp.ne.s32.totalorder %s45_s22, %s1573_s19  ;;  %p1579_p7 = scmp.lt.s32.totalorder %s1573_s19, %s1573_s19 }
  0x2e   :  { %p1580_p8 = por %p1579_p7, %p1578_p6 }
  0x30   :  { %p1581_p9 = pnand %p1580_p8, %p1574_p5 }
  0x32   :  { %1584 = shalt.err (!%p1581_p9)
}
  0x33   :  { %50 = dma.hbm_to_vmem [thread:$0]  %s1936_s2, 512, %s45_s22, [#allocation6], %s1638_s15, %s1638_s15, %s1639_s16  }
  0x34   :  { %s1642_s21 = smov [#allocation8]   ;;  %s1585_s26 = scalar_lea.hbm %s1940_s6, 512 }
  0x35   :  { %s62_s23 = sshll.u32 %s1642_s21, 4  ;;  %p1586_p10 = scmp.ne.s32.totalorder %s1940_s6, %s1585_s26  ;;  %s63_s23 = int_to_ptr.vmem [resolvable:$true] %s62_s23 }
  0x36   :  { %p1589_p11 = scmp.lt.u32.totalorder %s1585_s26, %s1940_s6 }
  0x38   :  { %p1591_p12 = pnand %p1589_p11, %p1586_p10 }
  0x3a   :  { %1594 = shalt.err (!%p1591_p12)
}
  0x3b   :  { %s1595_s28 = scalar_lea.vmem %s63_s23, 512  ;;  %p1600_p0 = scmp.lt.s32.totalorder %s63_s23, %s63_s23 }
  0x3c   :  { %p1596_p13 = scmp.ne.s32.totalorder %s63_s23, %s1595_s28  ;;  %p1601_p1 = scmp.lt.s32.totalorder %s1595_s28, %s1595_s28 }
  0x3e   :  { %p1602_p2 = por %p1601_p1, %p1600_p0 }
  0x40   :  { %p1603_p3 = pnand %p1602_p2, %p1596_p13 }
  0x42   :  { %1606 = shalt.err (!%p1603_p3)
}
  0x43   :  { %68 = dma.hbm_to_vmem [thread:$0]  %s1940_s6, 512, %s63_s23, [#allocation9], %s1638_s15, %s1638_s15, %s1639_s16  }
  0x44   :  { %1629 = dma.done.wait [#allocation3], 128  }
  0x45   :  { %1630 = vsyncadd [#allocation3], 4294967168 }
  0x46   :  { %1631 = dma.done.wait [#allocation6], 1536  }
  0x47   :  { %1632 = vsyncadd [#allocation6], 4294965760 }
  0x48   :  { %1633 = dma.done.wait [#allocation9], 512  }
  0x49   :  { %1634 = vsyncadd [#allocation9], 4294966784  ;;  %v1643_v0 = vmov 0.0|0.0   ;;  %vm1644_vm0 = vmmov 0   ;;  %v1645_v1 = vmov 0.0   ;;  %v84_v2 = vld [vmem:[#allocation5] sm:$0xff] }
  0x4a   :  { %1377 = vmatprep.subr.bf16.mxu0 %v1643_v0  ;;  %1389 = vmatprep.subr.bf16.mxu1 %v1643_v0  ;;  %v85_v3 = vld [vmem:[#allocation5 + $0x8] sm:$0xff]  ;;  %v86_v4 = vld [vmem:[#allocation5 + $0x10] sm:$0xff]  ;;  %v87_v6 = vld [vmem:[#allocation5 + $0x18] sm:$0xff]  ;;  %vm179_vm1 = vcmask 261120   ;;  %vm99_vm2 = vcmask 523264   ;;  %s1646_s9 = smov 64  }
  0x4b   :  { %1275 = vmatprep.mubr.msk.f32.mxu0 %vm1644_vm0, %v1645_v1  ;;  %1286 = vmatprep.mubr.msk.f32.mxu1 %vm1644_vm0, %v1645_v1  ;;  %v1378_v5 = vpack.c.bf16 %v85_v3, %v84_v2  ;;  %v173_v7 = vld [vmem:[#allocation7] sm:$0xff]  ;;  %v174_v8 = vld [vmem:[#allocation7 + $0x8] sm:$0xff]  ;;  %v1381_v9 = vpack.c.bf16 %v87_v6, %v86_v4  ;;  %v175_v11 = vld [vmem:[#allocation7 + $0x10] sm:$0xff]  ;;  %s1647_s12 = smov 32   ;;  %vm1034_vm3 = vcmask 1040384   ;;  %vm1036_vm4 = vcmask 1041408  }
  0x4c   :  { %v1757_v10 = vpack.c.bf16 %v174_v8, %v173_v7  ;;  %v176_v12 = vld [vmem:[#allocation7 + $0x18] sm:$0xff]  ;;  %v88_v13 = vld [vmem:[#allocation5 + $0x20] sm:$0xff]  ;;  %v89_v14 = vld [vmem:[#allocation5 + $0x28] sm:$0xff]  ;;  %vm1038_vm5 = vcmask 1042432   ;;  %vm1040_vm6 = vcmask 1043456   ;;  %vm1042_vm7 = vcmask 1044480  }
  0x4d   :  { %1379 = vmatpush3.bf16.msra.mxu0 %v1378_v5  ;;  %v1761_v15 = vpack.c.bf16 %v176_v12, %v175_v11  ;;  %v1384_v16 = vpack.c.bf16 %v89_v14, %v88_v13  ;;  %v90_v17 = vld [vmem:[#allocation5 + $0x30] sm:$0xff]  ;;  %v91_v18 = vld [vmem:[#allocation5 + $0x38] sm:$0xff]  ;;  %vm1044_vm8 = vcmask 1045504   ;;  %vm1046_vm9 = vcmask 1046528   ;;  %s1648_s13 = smov [#allocation10]  }
  0x4e   :  { %1380 = vmatprep.subr.bf16.mxu0 %v1643_v0  ;;  %1391 = vmatpush3.bf16.msra.mxu1 %v1757_v10  ;;  %v177_v19 = vld [vmem:[%s1938_s4] sm:$0x1]  ;;  %v1387_v20 = vpack.c.bf16 %v91_v18, %v90_v17  ;;  %vm1080_vm10 = vcmask 130048   ;;  %s1173_s14 = sshll.u32 %s1648_s13, 4  ;;  %s1174_s14 = int_to_ptr.vmem [resolvable:$true] %s1173_s14 }
  0x4f   :  { %1392 = vmatprep.subr.bf16.mxu1 %v1643_v0  ;;  %v83_v21 = vld [vmem:[#allocation2] sm:$0xff]  ;;  %s1607_s17 = scalar_lea.vmem %s1174_s14, 128  ;;  %p1612_p5 = scmp.lt.s32.totalorder %s1174_s14, %s1174_s14 }
  0x50   :  { %v1184_v24 = vld [vmem:[%s1937_s3] ss:$0 sm:$0xff]  ;;  %p1608_p4 = scmp.ne.s32.totalorder %s1174_s14, %s1607_s17  ;;  %p1613_p6 = scmp.lt.s32.totalorder %s1607_s17, %s1607_s17 }
  0x51   :  { %1382 = vmatpush3.bf16.msra.mxu0 %v1381_v9  ;;  %v1188_v30 = vld [vmem:[%s1939_s5] ss:$0 sm:$0xff] }
  0x52   :  { %1383 = vmatprep.subr.bf16.mxu0 %v1643_v0  ;;  %1394 = vmatpush3.bf16.msra.mxu1 %v1761_v15  ;;  %p1614_p7 = por %p1613_p6, %p1612_p5 }
  0x53   :  { %1395 = vmatprep.subr.bf16.mxu1 %v1643_v0 }
  0x54   :  { %p1615_p8 = pnand %p1614_p7, %p1608_p4 }
  0x55   :  { %1385 = vmatpush3.bf16.msra.mxu0 %v1384_v16  ;;  %1287 = vmatmul.mubr.msk.f32.vlgmr.msra.gmra.mrb[0].mxu1 %vm179_vm1, %v177_v19 }
  0x56   :  { %1386 = vmatprep.subr.bf16.mxu0 %v1643_v0  ;;  %1397 = vmatpush3.bf16.msra.mxu1 %v1757_v10 }
  0x57   :  { %1297 = vmatprep.mubr.msk.f32.mxu1 %vm1644_vm0, %v1645_v1  ;;  %1398 = vmatprep.subr.bf16.mxu1 %v1643_v0 }
  0x59   :  { %1388 = vmatpush3.bf16.msra.mxu0 %v1387_v20 }
  0x5a   :  { %1401 = vmatprep.subr.bf16.mxu0 %v1643_v0  ;;  %1400 = vmatpush3.bf16.msra.mxu1 %v1761_v15 }
  0x5b   :  { %1407 = vmatprep.subr.bf16.mxu1 %v1643_v0 }
  0x5c   :  { %1276 = vmatmul.mubr.msk.f32.vlgmr.msra.gmra.mrb[0].mxu0 %vm99_vm2, %v83_v21 }
  0x5d   :  { %1403 = vmatpush3.bf16.msra.mxu0 %v1757_v10  ;;  %1308 = vmatprep.mubr.msk.f32.mxu0 %vm1644_vm0, %v1645_v1 }
  0x5e   :  { %1404 = vmatprep.subr.bf16.mxu0 %v1643_v0 }
  0x61   :  { %1406 = vmatpush3.bf16.msra.mxu0 %v1761_v15 }
  0x62   :  { %1413 = vmatprep.subr.bf16.mxu0 %v1643_v0 }
 0x128   :  { %v249_v22 = vpop.f32.mrb[0].mxu1 }
 0x129   :  { %v1288_v23 = vpop.f32.mrb[1].mxu1 }
 0x12f   :  { %v169_v25 = vpop.f32.mrb[0].mxu0 }
 0x130   :  { %v1788_v26 = vadd.f32 %v1184_v24, %v169_v25  ;;  %v1277_v27 = vpop.f32.mrb[1].mxu0 }
 0x132   :  { %v253_v28 = vadd.f32 %v249_v22, %v1788_v26 }
 0x134   :  { %1455 = vtanh.f32 %v253_v28  ;;  %v1187_v31 = vmul.f32 -1.442695, %v253_v28 }
 0x136   :  { %1457 = vpow2.f32 %v1187_v31 }
 0x13e   :  { %v1456_v29 = vpop.eup %1455 }
 0x13f   :  { %271 = vrot.lane.b32.xlu0 %v1456_v29, %s1646_s9 }
 0x140   :  { %v1458_v32 = vpop.eup %1457 }
 0x141   :  { %v257_v33 = vadd.f32 1.0, %v1458_v32 }
 0x143   :  { %266 = vrot.lane.b32.xlu0 %v1188_v30, %s1647_s12  ;;  %1459 = vrcp.f32 %v257_v33 }
 0x14d   :  { %v1460_v34 = vpop.eup %1459 }
 0x1b1   :  { %v272_v35 = vpop.permute.xlu0 %271 }
 0x1b2   :  { %v274_v36 = vmul.f32 %v1460_v34, %v272_v35 }
 0x1b4   :  { %276 = vrot.lane.b32.xlu1 %v274_v36, %s1647_s12 }
 0x1b5   :  { %v267_v37 = vpop.permute.xlu0 %266 }
 0x1b6   :  { %v269_v38 = vmul.f32 %v1460_v34, %v267_v37 }
 0x226   :  { %v277_v39 = vpop.permute.xlu1 %276 }
 0x227   :  { %v279_v40 = vadd.f32 %v277_v39, %v269_v38 }
 0x229   :  { %1461 = vtanh.f32 %v279_v40  ;;  %v373_v56 = vrot.slane %v279_v40, 7 }
 0x233   :  { %v1462_v41 = vpop.eup %1461 }
 0x234   :  { %282 = vrot.lane.b32.xlu1 %v1462_v41, %s1646_s9 }
 0x2a6   :  { %v283_v42 = vpop.permute.xlu1 %282 }
 0x2a7   :  { %v1798_v43 = vmul.f32 %v1460_v34, %v283_v42 }
 0x2a9   :  { %287 = vrot.lane.b32.xlu0 %v1798_v43, %s1647_s12 }
 0x31b   :  { %v288_v44 = vpop.permute.xlu0 %287 }
 0x31c   :  { %1298 = vmatmul.mubr.msk.f32.vlgmr.msra.gmra.mrb[2].mxu1 %vm179_vm1, %v288_v44 }
 0x31d   :  { %1409 = vmatpush3.bf16.msra.mxu1 %v1757_v10  ;;  %1319 = vmatprep.mubr.msk.f32.mxu1 %vm1644_vm0, %v1645_v1 }
 0x31e   :  { %1410 = vmatprep.subr.bf16.mxu1 %v1643_v0 }
 0x321   :  { %1412 = vmatpush3.bf16.msra.mxu1 %v1761_v15 }
 0x322   :  { %1419 = vmatprep.subr.bf16.mxu1 %v1643_v0 }
 0x3ef   :  { %v357_v45 = vpop.f32.mrb[2].mxu1 }
 0x3f0   :  { %v362_v46 = vrot.slane %v357_v45, 7  ;;  %v1299_v47 = vpop.f32.mrb[3].mxu1 }
 0x3f2   :  { %v364_v48 = vadd.f32 %v362_v46, %v1788_v26 }
 0x3f4   :  { %1463 = vtanh.f32 %v364_v48  ;;  %v1190_v50 = vmul.f32 -1.442695, %v364_v48 }
 0x3f6   :  { %1465 = vpow2.f32 %v1190_v50 }
 0x3fe   :  { %v1464_v49 = vpop.eup %1463 }
 0x3ff   :  { %377 = vrot.lane.b32.xlu1 %v1464_v49, %s1646_s9 }
 0x400   :  { %v1466_v51 = vpop.eup %1465 }
 0x401   :  { %v368_v52 = vadd.f32 1.0, %v1466_v51 }
 0x403   :  { %1467 = vrcp.f32 %v368_v52 }
 0x40d   :  { %v1468_v53 = vpop.eup %1467 }
 0x40e   :  { %v375_v57 = vmul.f32 %v1468_v53, %v373_v56 }
 0x471   :  { %v378_v54 = vpop.permute.xlu1 %377 }
 0x472   :  { %v380_v55 = vmul.f32 %v1468_v53, %v378_v54 }
 0x474   :  { %382 = vrot.lane.b32.xlu0 %v380_v55, %s1647_s12 }
 0x4e6   :  { %v383_v58 = vpop.permute.xlu0 %382 }
 0x4e7   :  { %v385_v59 = vadd.f32 %v383_v58, %v375_v57 }
 0x4e9   :  { %1469 = vtanh.f32 %v385_v59  ;;  %v480_v16 = vrot.slane %v385_v59, 7 }
 0x4f3   :  { %v1470_v60 = vpop.eup %1469 }
 0x4f4   :  { %388 = vrot.lane.b32.xlu1 %v1470_v60, %s1646_s9 }
 0x566   :  { %v389_v61 = vpop.permute.xlu1 %388 }
 0x567   :  { %v1813_v62 = vmul.f32 %v1468_v53, %v389_v61 }
 0x569   :  { %v393_v63 = vrot.slane %v1813_v62, 1  ;;  %v1035_v23 = vsel %vm1034_vm3, %v1798_v43, %v1813_v62 }
 0x56b   :  { %394 = vrot.lane.b32.xlu0 %v393_v63, %s1647_s12 }
 0x5dd   :  { %v395_v2 = vpop.permute.xlu0 %394 }
 0x5de   :  { %1309 = vmatmul.mubr.msk.f32.vlgmr.msra.gmra.mrb[2].mxu0 %vm179_vm1, %v395_v2 }
 0x5df   :  { %1415 = vmatpush3.bf16.msra.mxu0 %v1757_v10  ;;  %1330 = vmatprep.mubr.msk.f32.mxu0 %vm1644_vm0, %v1645_v1 }
 0x5e0   :  { %1416 = vmatprep.subr.bf16.mxu0 %v1643_v0 }
 0x5e3   :  { %1418 = vmatpush3.bf16.msra.mxu0 %v1761_v15 }
 0x5e4   :  { %1425 = vmatprep.subr.bf16.mxu0 %v1643_v0 }
 0x6b1   :  { %v464_v3 = vpop.f32.mrb[2].mxu0 }
 0x6b2   :  { %v469_v4 = vrot.slane %v464_v3, 6  ;;  %v1310_v5 = vpop.f32.mrb[3].mxu0 }
 0x6b4   :  { %v471_v6 = vadd.f32 %v469_v4, %v1788_v26 }
 0x6b6   :  { %1471 = vtanh.f32 %v471_v6  ;;  %v1192_v8 = vmul.f32 -1.442695, %v471_v6 }
 0x6b8   :  { %1473 = vpow2.f32 %v1192_v8 }
 0x6c0   :  { %v1472_v7 = vpop.eup %1471 }
 0x6c1   :  { %484 = vrot.lane.b32.xlu1 %v1472_v7, %s1646_s9 }
 0x6c2   :  { %v1474_v9 = vpop.eup %1473 }
 0x6c3   :  { %v475_v11 = vadd.f32 1.0, %v1474_v9 }
 0x6c5   :  { %1475 = vrcp.f32 %v475_v11 }
 0x6cf   :  { %v1476_v12 = vpop.eup %1475 }
 0x6d0   :  { %v482_v17 = vmul.f32 %v1476_v12, %v480_v16 }
 0x733   :  { %v485_v13 = vpop.permute.xlu1 %484 }
 0x734   :  { %v487_v14 = vmul.f32 %v1476_v12, %v485_v13 }
 0x736   :  { %489 = vrot.lane.b32.xlu0 %v487_v14, %s1647_s12 }
 0x7a8   :  { %v490_v18 = vpop.permute.xlu0 %489 }
 0x7a9   :  { %v492_v19 = vadd.f32 %v490_v18, %v482_v17 }
 0x7ab   :  { %1477 = vtanh.f32 %v492_v19  ;;  %v587_v39 = vrot.slane %v492_v19, 7 }
 0x7b5   :  { %v1478_v20 = vpop.eup %1477 }
 0x7b6   :  { %495 = vrot.lane.b32.xlu1 %v1478_v20, %s1646_s9 }
 0x828   :  { %v496_v21 = vpop.permute.xlu1 %495 }
 0x829   :  { %v1828_v22 = vmul.f32 %v1476_v12, %v496_v21 }
 0x82b   :  { %v1037_v24 = vsel %vm1036_vm4, %v1035_v23, %v1828_v22  ;;  %v500_v25 = vrot.slane %v1828_v22, 2 }
 0x82d   :  { %501 = vrot.lane.b32.xlu0 %v500_v25, %s1647_s12 }
 0x89f   :  { %v502_v27 = vpop.permute.xlu0 %501 }
 0x8a0   :  { %1320 = vmatmul.mubr.msk.f32.vlgmr.msra.gmra.mrb[4].mxu1 %vm179_vm1, %v502_v27 }
 0x8a1   :  { %1421 = vmatpush3.bf16.msra.mxu1 %v1757_v10  ;;  %1341 = vmatprep.mubr.msk.f32.mxu1 %vm1644_vm0, %v1645_v1 }
 0x8a2   :  { %1422 = vmatprep.subr.bf16.mxu1 %v1643_v0 }
 0x8a5   :  { %1424 = vmatpush3.bf16.msra.mxu1 %v1761_v15 }
 0x8a6   :  { %1431 = vmatprep.subr.bf16.mxu1 %v1643_v0 }
 0x973   :  { %v571_v28 = vpop.f32.mrb[4].mxu1 }
 0x974   :  { %v576_v29 = vrot.slane %v571_v28, 5  ;;  %v1321_v30 = vpop.f32.mrb[5].mxu1 }
 0x976   :  { %v578_v31 = vadd.f32 %v576_v29, %v1788_v26 }
 0x978   :  { %1479 = vtanh.f32 %v578_v31  ;;  %v1194_v33 = vmul.f32 -1.442695, %v578_v31 }
 0x97a   :  { %1481 = vpow2.f32 %v1194_v33 }
 0x982   :  { %v1480_v32 = vpop.eup %1479 }
 0x983   :  { %591 = vrot.lane.b32.xlu1 %v1480_v32, %s1646_s9 }
 0x984   :  { %v1482_v34 = vpop.eup %1481 }
 0x985   :  { %v582_v35 = vadd.f32 1.0, %v1482_v34 }
 0x987   :  { %1483 = vrcp.f32 %v582_v35 }
 0x991   :  { %v1484_v36 = vpop.eup %1483 }
 0x992   :  { %v589_v40 = vmul.f32 %v1484_v36, %v587_v39 }
 0x9f5   :  { %v592_v37 = vpop.permute.xlu1 %591 }
 0x9f6   :  { %v594_v38 = vmul.f32 %v1484_v36, %v592_v37 }
 0x9f8   :  { %596 = vrot.lane.b32.xlu0 %v594_v38, %s1647_s12 }
 0xa6a   :  { %v597_v41 = vpop.permute.xlu0 %596 }
 0xa6b   :  { %v599_v42 = vadd.f32 %v597_v41, %v589_v40 }
 0xa6d   :  { %1485 = vtanh.f32 %v599_v42  ;;  %v694_v61 = vrot.slane %v599_v42, 7 }
 0xa77   :  { %v1486_v44 = vpop.eup %1485 }
 0xa78   :  { %602 = vrot.lane.b32.xlu1 %v1486_v44, %s1646_s9 }
 0xaea   :  { %v603_v45 = vpop.permute.xlu1 %602 }
 0xaeb   :  { %v1848_v46 = vmul.f32 %v1484_v36, %v603_v45 }
 0xaed   :  { %v1039_v47 = vsel %vm1038_vm5, %v1037_v24, %v1848_v46  ;;  %v607_v48 = vrot.slane %v1848_v46, 3 }
 0xaef   :  { %608 = vrot.lane.b32.xlu0 %v607_v48, %s1647_s12 }
 0xb61   :  { %v609_v49 = vpop.permute.xlu0 %608 }
 0xb62   :  { %1331 = vmatmul.mubr.msk.f32.vlgmr.msra.gmra.mrb[4].mxu0 %vm179_vm1, %v609_v49 }
 0xb63   :  { %1427 = vmatpush3.bf16.msra.mxu0 %v1757_v10  ;;  %1352 = vmatprep.mubr.msk.f32.mxu0 %vm1644_vm0, %v1645_v1 }
 0xb64   :  { %1428 = vmatprep.subr.bf16.mxu0 %v1643_v0 }
 0xb67   :  { %1430 = vmatpush3.bf16.msra.mxu0 %v1761_v15 }
 0xb68   :  { %1437 = vmatprep.subr.bf16.mxu0 %v1643_v0 }
 0xc35   :  { %v678_v50 = vpop.f32.mrb[4].mxu0 }
 0xc36   :  { %v683_v51 = vrot.slane %v678_v50, 4  ;;  %v1332_v52 = vpop.f32.mrb[5].mxu0 }
 0xc38   :  { %v685_v53 = vadd.f32 %v683_v51, %v1788_v26 }
 0xc3a   :  { %1487 = vtanh.f32 %v685_v53  ;;  %v1196_v55 = vmul.f32 -1.442695, %v685_v53 }
 0xc3c   :  { %1489 = vpow2.f32 %v1196_v55 }
 0xc44   :  { %v1488_v54 = vpop.eup %1487 }
 0xc45   :  { %698 = vrot.lane.b32.xlu1 %v1488_v54, %s1646_s9 }
 0xc46   :  { %v1490_v56 = vpop.eup %1489 }
 0xc47   :  { %v689_v57 = vadd.f32 1.0, %v1490_v56 }
 0xc49   :  { %1491 = vrcp.f32 %v689_v57 }
 0xc53   :  { %v1492_v58 = vpop.eup %1491 }
 0xc54   :  { %v696_v63 = vmul.f32 %v1492_v58, %v694_v61 }
 0xcb7   :  { %v699_v59 = vpop.permute.xlu1 %698 }
 0xcb8   :  { %v701_v60 = vmul.f32 %v1492_v58, %v699_v59 }
 0xcba   :  { %703 = vrot.lane.b32.xlu0 %v701_v60, %s1647_s12 }
 0xd2c   :  { %v704_v2 = vpop.permute.xlu0 %703 }
 0xd2d   :  { %v706_v3 = vadd.f32 %v704_v2, %v696_v63 }
 0xd2f   :  { %1493 = vtanh.f32 %v706_v3 }
 0xd39   :  { %v1494_v4 = vpop.eup %1493 }
 0xd3a   :  { %709 = vrot.lane.b32.xlu1 %v1494_v4, %s1646_s9 }
 0xdac   :  { %v710_v5 = vpop.permute.xlu1 %709 }
 0xdad   :  { %v1865_v6 = vmul.f32 %v1492_v58, %v710_v5 }
 0xdaf   :  { %v1041_v7 = vsel %vm1040_vm6, %v1039_v47, %v1865_v6  ;;  %v714_v8 = vrot.slane %v1865_v6, 4 }
 0xdb1   :  { %715 = vrot.lane.b32.xlu0 %v714_v8, %s1647_s12 }
 0xe23   :  { %v716_v9 = vpop.permute.xlu0 %715 }
 0xe24   :  { %1342 = vmatmul.mubr.msk.f32.vlgmr.msra.gmra.mrb[6].mxu1 %vm179_vm1, %v716_v9 }
 0xe25   :  { %1433 = vmatpush3.bf16.msra.mxu1 %v1757_v10  ;;  %1363 = vmatprep.mubr.msk.f32.mxu1 %vm1644_vm0, %v1645_v1 }
 0xe26   :  { %1434 = vmatprep.subr.bf16.mxu1 %v1643_v0 }
 0xe29   :  { %1436 = vmatpush3.bf16.msra.mxu1 %v1761_v15  ;;  %v801_v15 = vrot.slane %v706_v3, 7 }
 0xef7   :  { %v785_v11 = vpop.f32.mrb[6].mxu1 }
 0xef8   :  { %v790_v12 = vrot.slane %v785_v11, 3  ;;  %v1343_v13 = vpop.f32.mrb[7].mxu1  ;;  %v1082_v11 = vld [vmem:[#allocation8] sm:$0xff] }
 0xef9   :  { %v1084_v13 = vld [vmem:[#allocation8 + $0x10] sm:$0xff] }
 0xefa   :  { %v792_v14 = vadd.f32 %v790_v12, %v1788_v26  ;;  %v1083_v12 = vld [vmem:[#allocation8 + $0x8] sm:$0xff] }
 0xefc   :  { %1495 = vtanh.f32 %v792_v14  ;;  %v1198_v17 = vmul.f32 -1.442695, %v792_v14  ;;  %v1438_v14 = vpack.c.bf16 %v1083_v12, %v1082_v11 }
 0xefe   :  { %1497 = vpow2.f32 %v1198_v17 }
 0xf06   :  { %v1496_v16 = vpop.eup %1495 }
 0xf07   :  { %805 = vrot.lane.b32.xlu1 %v1496_v16, %s1646_s9  ;;  %v1085_v16 = vld [vmem:[#allocation8 + $0x18] sm:$0xff] }
 0xf08   :  { %v1498_v18 = vpop.eup %1497  ;;  %v1441_v17 = vpack.c.bf16 %v1085_v16, %v1084_v13 }
 0xf09   :  { %v796_v10 = vadd.f32 1.0, %v1498_v18 }
 0xf0b   :  { %1499 = vrcp.f32 %v796_v10 }
 0xf15   :  { %v1500_v19 = vpop.eup %1499 }
 0xf16   :  { %v803_v23 = vmul.f32 %v1500_v19, %v801_v15 }
 0xf79   :  { %v806_v20 = vpop.permute.xlu1 %805 }
 0xf7a   :  { %v808_v21 = vmul.f32 %v1500_v19, %v806_v20 }
 0xf7c   :  { %810 = vrot.lane.b32.xlu0 %v808_v21, %s1647_s12 }
 0xfee   :  { %v811_v24 = vpop.permute.xlu0 %810 }
 0xfef   :  { %v813_v25 = vadd.f32 %v811_v24, %v803_v23  ;;  %v1055_v23 = vrot.slane %v1865_v6, 1 }
 0xff1   :  { %1501 = vtanh.f32 %v813_v25 }
 0xffb   :  { %v1502_v27 = vpop.eup %1501 }
 0xffc   :  { %816 = vrot.lane.b32.xlu1 %v1502_v27, %s1646_s9  ;;  %v1059_v27 = vrot.slane %v1828_v22, 5 }
0x106e   :  { %v817_v28 = vpop.permute.xlu1 %816 }
0x106f   :  { %v1881_v29 = vmul.f32 %v1500_v19, %v817_v28 }
0x1071   :  { %v1043_v30 = vsel %vm1042_vm7, %v1041_v7, %v1881_v29  ;;  %v821_v31 = vrot.slane %v1881_v29, 5  ;;  %v1053_v15 = vrot.slane %v1881_v29, 3  ;;  %v1063_v29 = vrot.slane %v1798_v43, 1 }
0x1073   :  { %822 = vrot.lane.b32.xlu0 %v821_v31, %s1647_s12 }
0x10e5   :  { %v823_v32 = vpop.permute.xlu0 %822 }
0x10e6   :  { %1353 = vmatmul.mubr.msk.f32.vlgmr.msra.gmra.mrb[6].mxu0 %vm179_vm1, %v823_v32 }
0x10e7   :  { %1374 = vmatprep.mubr.msk.f32.mxu0 %vm1644_vm0, %v1645_v1  ;;  %v908_v1 = vrot.slane %v813_v25, 7  ;;  %1439 = vmatpush3.bf16.msra.mxu0 %v1438_v14  ;;  %v1057_v25 = vrot.slane %v1848_v46, 7 }
0x10e8   :  { %1440 = vmatprep.subr.bf16.mxu0 %v1643_v0 }
0x10eb   :  { %1442 = vmatpush3.bf16.msra.mxu0 %v1441_v17 }
0x11b9   :  { %v892_v33 = vpop.f32.mrb[6].mxu0 }
0x11ba   :  { %v897_v34 = vrot.slane %v892_v33, 2  ;;  %v1354_v35 = vpop.f32.mrb[7].mxu0 }
0x11bc   :  { %v899_v36 = vadd.f32 %v897_v34, %v1788_v26 }
0x11be   :  { %1503 = vtanh.f32 %v899_v36  ;;  %v1200_v38 = vmul.f32 -1.442695, %v899_v36 }
0x11c0   :  { %1505 = vpow2.f32 %v1200_v38 }
0x11c8   :  { %v1504_v37 = vpop.eup %1503 }
0x11c9   :  { %912 = vrot.lane.b32.xlu1 %v1504_v37, %s1646_s9 }
0x11ca   :  { %v1506_v39 = vpop.eup %1505 }
0x11cb   :  { %v903_v40 = vadd.f32 1.0, %v1506_v39 }
0x11cd   :  { %1507 = vrcp.f32 %v903_v40 }
0x11d7   :  { %v1508_v41 = vpop.eup %1507 }
0x11d8   :  { %v910_v45 = vmul.f32 %v1508_v41, %v908_v1 }
0x123b   :  { %v913_v42 = vpop.permute.xlu1 %912 }
0x123c   :  { %v915_v44 = vmul.f32 %v1508_v41, %v913_v42 }
0x123e   :  { %917 = vrot.lane.b32.xlu0 %v915_v44, %s1647_s12 }
0x12b0   :  { %v918_v47 = vpop.permute.xlu0 %917 }
0x12b1   :  { %v920_v48 = vadd.f32 %v918_v47, %v910_v45 }
0x12b3   :  { %1509 = vtanh.f32 %v920_v48  ;;  %v1015_v5 = vrot.slane %v920_v48, 7 }
0x12bd   :  { %v1510_v49 = vpop.eup %1509 }
0x12be   :  { %923 = vrot.lane.b32.xlu1 %v1510_v49, %s1646_s9 }
0x1330   :  { %v924_v50 = vpop.permute.xlu1 %923 }
0x1331   :  { %v926_v51 = vmul.f32 %v1508_v41, %v924_v50 }
0x1333   :  { %v928_v52 = vrot.slane %v926_v51, 6  ;;  %v1045_v53 = vsel %vm1044_vm8, %v1043_v30, %v926_v51  ;;  %v1051_v19 = vrot.slane %v926_v51, 5  ;;  %v1061_v30 = vrot.slane %v1813_v62, 3  ;;  %v1203_v62 = vld [vmem:[%s1941_s7] ss:$0 sm:$0xff] }
0x1335   :  { %929 = vrot.lane.b32.xlu0 %v928_v52, %s1647_s12 }
0x13a7   :  { %v930_v54 = vpop.permute.xlu0 %929 }
0x13a8   :  { %1364 = vmatmul.mubr.msk.f32.vlgmr.msra.gmra.mrb[8].mxu1 %vm179_vm1, %v930_v54 }
0x147b   :  { %v999_v55 = vpop.f32.mrb[8].mxu1 }
0x147c   :  { %v1004_v56 = vrot.slane %v999_v55, 1  ;;  %v1365_v57 = vpop.f32.mrb[9].mxu1 }
0x147e   :  { %v1006_v58 = vadd.f32 %v1004_v56, %v1788_v26 }
0x1480   :  { %1511 = vtanh.f32 %v1006_v58  ;;  %v1202_v60 = vmul.f32 -1.442695, %v1006_v58 }
0x1482   :  { %1513 = vpow2.f32 %v1202_v60 }
0x148a   :  { %v1512_v59 = vpop.eup %1511 }
0x148b   :  { %1019 = vrot.lane.b32.xlu1 %v1512_v59, %s1646_s9 }
0x148c   :  { %v1514_v61 = vpop.eup %1513 }
0x148d   :  { %v1010_v63 = vadd.f32 1.0, %v1514_v61 }
0x148f   :  { %1515 = vrcp.f32 %v1010_v63 }
0x1499   :  { %v1516_v2 = vpop.eup %1515 }
0x149a   :  { %v1017_v7 = vmul.f32 %v1516_v2, %v1015_v5 }
0x14fd   :  { %v1020_v3 = vpop.permute.xlu1 %1019 }
0x14fe   :  { %v1022_v4 = vmul.f32 %v1516_v2, %v1020_v3 }
0x1500   :  { %1024 = vrot.lane.b32.xlu0 %v1022_v4, %s1647_s12 }
0x1572   :  { %v1025_v8 = vpop.permute.xlu0 %1024 }
0x1573   :  { %v1027_v9 = vadd.f32 %v1025_v8, %v1017_v7 }
0x1575   :  { %1517 = vtanh.f32 %v1027_v9 }
0x157f   :  { %v1518_v26 = vpop.eup %1517 }
0x1580   :  { %1030 = vrot.lane.b32.xlu1 %v1518_v26, %s1646_s9 }
0x15f2   :  { %v1031_v18 = vpop.permute.xlu1 %1030 }
0x15f3   :  { %v1033_v10 = vmul.f32 %v1516_v2, %v1031_v18 }
0x15f5   :  { %v1049_v20 = vrot.slane %v1033_v10, 7  ;;  %v1047_v21 = vsel %vm1046_vm9, %v1045_v53, %v1033_v10 }
0x15f6   :  { %1073 = vrot.lane.b32.xlu0 %v1047_v21, %s1647_s12 }
0x15f7   :  { %v1065_v24 = vsel %vm1034_vm3, %v1049_v20, %v1051_v19 }
0x15f8   :  { %v1066_v0 = vsel %vm1036_vm4, %v1065_v24, %v1053_v15 }
0x15f9   :  { %v1067_v28 = vsel %vm1038_vm5, %v1066_v0, %v1055_v23 }
0x15fa   :  { %v1068_v31 = vsel %vm1040_vm6, %v1067_v28, %v1057_v25 }
0x15fb   :  { %v1069_v32 = vsel %vm1042_vm7, %v1068_v31, %v1059_v27 }
0x15fc   :  { %v1070_v6 = vsel %vm1044_vm8, %v1069_v32, %v1061_v30 }
0x15fd   :  { %v1071_v33 = vsel %vm1046_vm9, %v1070_v6, %v1063_v29 }
0x15fe   :  { %1077 = vrot.lane.b32.xlu1 %v1071_v33, %s1647_s12 }
0x1668   :  { %v1074_v46 = vpop.permute.xlu0 %1073 }
0x1670   :  { %v1078_v34 = vpop.permute.xlu1 %1077 }
0x1671   :  { %v1081_v22 = vsel %vm1080_vm10, %v1074_v46, %v1078_v34 }
0x1672   :  { %1375 = vmatmul.mubr.msk.f32.vlgmr.msra.gmra.mrb[8].mxu0 %vm179_vm1, %v1081_v22 }
0x1745   :  { %v1162_v43 = vpop.f32.mrb[8].mxu0 }
0x1746   :  { %v1163_v35 = vadd.f32 %v1203_v62, %v1162_v43  ;;  %v1376_v36 = vpop.f32.mrb[9].mxu0 }
0x1748   :  { %1166 = vst [vmem:[#allocation10] sm:$0xff] %v1163_v35 }
0x1749   :  { %1618 = shalt.err (!%p1615_p8)
}
0x174a   :  { %s1619_s0 = scalar_lea.hbm %s1942_s8, 128 }
0x174b   :  { %p1620_p9 = scmp.ne.s32.totalorder %s1942_s8, %s1619_s0  ;;  %p1623_p10 = scmp.lt.u32.totalorder %s1619_s0, %s1942_s8 }
0x174d   :  { %p1625_p11 = pnand %p1623_p10, %p1620_p9 }
0x174f   :  { %1628 = shalt.err (!%p1625_p11)
}
0x1750   :  { %1176 = dma.vmem_to_hbm [thread:$0]  %s1174_s14, 128, %s1942_s8, [#allocation4]  }
0x1751   :  { %1635 = dma.done.wait [#allocation4], 128  }
0x1752   :  { %1636 = vsyncadd [#allocation4], 4294967168 }
0x1753   :  { %1180 = vsyncpa [#allocation3], 1 }
0x1754   :  { %1181 = vsyncpa [#allocation6], 1 }
0x1755   :  { %1182 = vsyncpa [#allocation9], 1 }
0x1756   :  { %1183 = vsyncpa [#allocation4], 1 }

</bundles_post_ra>
